<compile_context>
chip_gen: v7x
topology: tpu7x:2x2x1
jax: 0.10.0
libtpu: 0.0.40
codegen_flags: <defaults>
</compile_context>

<pallas_src>
import functools

import jax
import jax.numpy as jnp
from jax import lax
from jax.experimental import pallas as pl
from jax.experimental.pallas import tpu as pltpu


# Raise toward 64-100 MiB on v5e/v6e for large tiles; keep the per-step
# working set <= ~28 MiB on v7x (64 MiB physical VMEM).
_VMEM_LIMIT = 32 * 1024 * 1024


def _pick_block(n, pref, align):
    """Largest multiple of `align` that divides n and is <= pref, else n (full)."""
    if n <= pref:
        return n
    t = (pref // align) * align
    while t >= align:
        if n % t == 0:
            return t
        t -= align
    return n


# ----------------------------------------------------------------------------
# 1x1 Conv1d == channel matmul:  out[b, o, n] = sum_c W[o, c] x[b, c, n] (+ b[o])
# Tiled over the spatial axis; the weight stays resident in VMEM.
# ----------------------------------------------------------------------------
def _proj_kernel(x_ref, w_ref, o_ref):
    o_ref[...] = jnp.dot(w_ref[...], x_ref[...],
                         preferred_element_type=jnp.float32).astype(o_ref.dtype)


def _proj_bias_kernel(x_ref, w_ref, b_ref, o_ref):
    o = jnp.dot(w_ref[...], x_ref[...], preferred_element_type=jnp.float32)
    o_ref[...] = (o + b_ref[...]).astype(o_ref.dtype)


def conv1x1(x, w, bias=None, *, tn_pref=512):
    """x: (B, Cin, N), w: (Cout, Cin), bias: (Cout,) or None -> (B, Cout, N)."""
    b, cin, n = x.shape
    cout = w.shape[0]
    tn = _pick_block(n, tn_pref, 128)
    sq = pl.Squeezed()

    in_specs = [
        pl.BlockSpec((sq, cin, tn), lambda i, j: (i, 0, j)),
        pl.BlockSpec((cout, cin), lambda i, j: (0, 0)),
    ]
    args = [x, w]
    kernel = _proj_kernel
    if bias is not None:
        in_specs.append(pl.BlockSpec((cout, 1), lambda i, j: (0, 0)))
        args.append(bias.reshape(cout, 1).astype(x.dtype))
        kernel = _proj_bias_kernel

    return pl.pallas_call(
        kernel,
        out_shape=jax.ShapeDtypeStruct((b, cout, n), x.dtype),
        grid_spec=pltpu.PrefetchScalarGridSpec(
            num_scalar_prefetch=0,
            grid=(b, n // tn),
            in_specs=in_specs,
            out_specs=pl.BlockSpec((sq, cout, tn), lambda i, j: (i, 0, j)),
        ),
        compiler_params=pltpu.CompilerParams(
            dimension_semantics=("parallel", "parallel"),
            vmem_limit_bytes=_VMEM_LIMIT),
    )(*args)


# ----------------------------------------------------------------------------
# RPE attention core with fused indicator projection + online softmax.
#   grid = (B, H, N//tq, N//tk);  k-axis last, "arbitrary".
# ----------------------------------------------------------------------------
def _rpe_attn_kernel(m_sm, q_ref, k_ref, v_ref, ind_ref, wq_ref, wk_ref,
                     o_ref, m_sc, l_sc, acc_sc, *, scale):
    # views: q (D, tq), k/v (D, tk), ind (C, tq, tk), wq/wk (D, C), o (D, tq)
    hi = pl.program_id(1)
    kj = pl.program_id(3)
    n_ind = ind_ref.shape[0]

    @pl.when(kj == 0)
    def _():
        m_sc[...] = jnp.full_like(m_sc, -jnp.inf)
        l_sc[...] = jnp.zeros_like(l_sc)
        acc_sc[...] = jnp.zeros_like(acc_sc)

    q = q_ref[...]                       # (D, tq)
    k = k_ref[...]                       # (D, tk)

    # MXU: raw q.k cross term, contraction on D, no explicit transposes.
    s = lax.dot_general(q, k, (((0,), (0,)), ((), ())),
                        preferred_element_type=jnp.float32)          # (tq, tk)

    # Tiny per-tile projections of the RPE weights (MXU):
    #   A[i, c] = sum_d q[d, i] * Wk[d, c];   B[c, j] = sum_d Wq[d, c] * k[d, j]
    a_ic = lax.dot_general(q, wk_ref[...], (((0,), (0,)), ((), ())),
                           preferred_element_type=jnp.float32)        # (tq, C)
    b_cj = lax.dot_general(wq_ref[...], k, (((0,), (0,)), ((), ())),
                           preferred_element_type=jnp.float32)        # (C, tk)

    # Fused relative-position term; ind_q / ind_k are never materialized.
    #   s += sum_c ind_c * (A[:, c] + B[c, :] + sum_c' M[c, c'] * ind_c')
    ind = [ind_ref[c] for c in range(n_ind)]                          # C x (tq, tk)
    base = hi * (n_ind * n_ind)
    for c in range(n_ind):
        coeff = a_ic[:, c:c + 1] + b_cj[c:c + 1, :]                   # (tq, tk)
        for c2 in range(n_ind):
            coeff = coeff + m_sm[base + c * n_ind + c2] * ind[c2]
        s = s + ind[c] * coeff
    s = s * scale

    # Online softmax over the key axis.
    m_prev = m_sc[...]                                                # (tq, 1)
    m_new = jnp.maximum(m_prev, jnp.max(s, axis=-1, keepdims=True))
    alpha = jnp.exp(m_prev - m_new)
    p = jnp.exp(s - m_new)                                            # (tq, tk)
    l_sc[...] = alpha * l_sc[...] + jnp.sum(p, axis=-1, keepdims=True)
    m_sc[...] = m_new

    # MXU: p @ v^T via contracting dims (no explicit transpose of v).
    pv = lax.dot_general(p, v_ref[...], (((1,), (1,)), ((), ())),
                         preferred_element_type=jnp.float32)          # (tq, D)
    acc_sc[...] = alpha * acc_sc[...] + pv

    @pl.when(kj == pl.num_programs(3) - 1)
    def _():
        # Only (tq,) values are divided at finalize, so exact reciprocal is free.
        inv_l = pl.reciprocal(l_sc[...], approx=False)
        # Lane-dense (D, tq) store -> output layout (B, H, D, N).
        o_ref[...] = jnp.transpose(acc_sc[...] * inv_l).astype(o_ref.dtype)


def rpe_attention_core(q, k, v, indicator, w_iq, w_ik, scale,
                       *, tq_pref=128, tk_pref=256):
    """q/k/v: (B,H,D,N); indicator: (B,C,N,N); w_iq/w_ik: (H,D,C) -> (B,H,D,N)."""
    b, h, d, n = q.shape
    cdim = indicator.shape[1]
    tq = _pick_block(n, tq_pref, 8)
    tk = _pick_block(n, tk_pref, 128)

    # M[h, c, c'] = sum_d Wq[h, d, c] * Wk[h, d, c'];  flattened -> SMEM prefetch.
    m_flat = jnp.einsum("hdc,hde->hce", w_iq, w_ik).reshape(-1).astype(jnp.float32)

    sq = pl.Squeezed()
    kern = functools.partial(_rpe_attn_kernel, scale=scale)
    return pl.pallas_call(
        kern,
        out_shape=jax.ShapeDtypeStruct((b, h, d, n), q.dtype),
        grid_spec=pltpu.PrefetchScalarGridSpec(
            num_scalar_prefetch=1,                 # m_flat -> SMEM
            grid=(b, h, n // tq, n // tk),
            in_specs=[
                pl.BlockSpec((sq, sq, d, tq),
                             lambda bi, hi, qi, ki, m: (bi, hi, 0, qi)),
                pl.BlockSpec((sq, sq, d, tk),
                             lambda bi, hi, qi, ki, m: (bi, hi, 0, ki)),
                pl.BlockSpec((sq, sq, d, tk),
                             lambda bi, hi, qi, ki, m: (bi, hi, 0, ki)),
                pl.BlockSpec((sq, cdim, tq, tk),
                             lambda bi, hi, qi, ki, m: (bi, 0, qi, ki)),
                pl.BlockSpec((sq, d, cdim),
                             lambda bi, hi, qi, ki, m: (hi, 0, 0)),
                pl.BlockSpec((sq, d, cdim),
                             lambda bi, hi, qi, ki, m: (hi, 0, 0)),
            ],
            out_specs=pl.BlockSpec((sq, sq, d, tq),
                                   lambda bi, hi, qi, ki, m: (bi, hi, 0, qi)),
            scratch_shapes=[
                pltpu.VMEM((tq, 1), jnp.float32),    # running max
                pltpu.VMEM((tq, 1), jnp.float32),    # running denom
                pltpu.VMEM((tq, d), jnp.float32),    # output accumulator
            ],
        ),
        compiler_params=pltpu.CompilerParams(
            dimension_semantics=("parallel", "parallel", "parallel", "arbitrary"),
            vmem_limit_bytes=_VMEM_LIMIT),
    )(m_flat, q, k, v, indicator, w_iq, w_ik)


# ----------------------------------------------------------------------------
# Full RPEAttention.forward
# ----------------------------------------------------------------------------
def rpe_attention_forward(params, x, indicator, heads, dim_head):
    b, _, n = x.shape
    ind_dim = indicator.shape[1]
    hidden = heads * dim_head
    scale = dim_head ** (-0.5)

    # to_qkv (bias=False)
    qkv = conv1x1(x, params["w_qkv"])                    # (B, 3*hidden, N)
    q, k, v = jnp.split(qkv, 3, axis=1)
    q = q.reshape(b, heads, dim_head, n)
    k = k.reshape(b, heads, dim_head, n)
    v = v.reshape(b, heads, dim_head, n)

    # ind_qk weights, split per head; the projection itself is fused in-kernel.
    w_ind = params["w_ind"]                              # (2*hidden, ind_dim)
    w_iq = w_ind[:hidden].reshape(heads, dim_head, ind_dim)
    w_ik = w_ind[hidden:].reshape(heads, dim_head, ind_dim)

    out = rpe_attention_core(q, k, v, indicator, w_iq, w_ik, scale)  # (B,H,D,N)
    out = out.reshape(b, hidden, n)                      # 'b h d n -> b (h d) n'

    # to_out (with bias)
    return conv1x1(out, params["w_out"], params["b_out"])


# ----------------------------------------------------------------------------
# Pure-JAX reference for verification
# ----------------------------------------------------------------------------
def reference_forward(params, x, indicator, heads, dim_head):
    b, c, n = x.shape
    ind_dim = indicator.shape[1]
    hidden = heads * dim_head
    scale = dim_head ** (-0.5)

    qkv = jnp.einsum("oc,bcn->bon", params["w_qkv"], x)
    q, k, v = jnp.split(qkv, 3, axis=1)
    q = q.reshape(b, heads, dim_head, n)
    k = k.reshape(b, heads, dim_head, n)
    v = v.reshape(b, heads, dim_head, n)

    ind = jnp.einsum("oc,bcn->bon", params["w_ind"],
                     indicator.reshape(b, ind_dim, n * n))
    ind_q, ind_k = jnp.split(ind, 2, axis=1)
    ind_q = ind_q.reshape(b, heads, dim_head, n, n)
    ind_k = ind_k.reshape(b, heads, dim_head, n, n)

    qq = (q[..., :, None] + ind_q) * scale
    kk = k[..., None, :] + ind_k
    sim = jnp.sum(qq * kk, axis=2)                 # (B, H, N, N)
    attn = jax.nn.softmax(sim, axis=-1)
    out = jnp.einsum("bhij,bhdj->bhid", attn, v)   # (B, H, N, D)
    out = jnp.transpose(out, (0, 1, 3, 2)).reshape(b, hidden, n)
    return (jnp.einsum("oc,bcn->bon", params["w_out"], out)
            + params["b_out"][None, :, None])


if __name__ == "__main__":
    # Small shapes consistent with the module (heads=4, dim_head=32, ind_dim=5).
    B, DIM, N = 2, 16, 16
    IND_DIM, HEADS, DIM_HEAD = 5, 4, 32
    HIDDEN = HEADS * DIM_HEAD

    key = jax.random.PRNGKey(0)
    ks = jax.random.split(key, 6)
    x = jax.random.normal(ks[0], (B, DIM, N), jnp.float32)
    indicator = jax.random.normal(ks[1], (B, IND_DIM, N, N), jnp.float32)

    # Deterministic synthetic parameters (Conv1d kernel_size=1 weights).
    params = {
        "w_qkv": 0.05 * jax.random.normal(ks[2], (3 * HIDDEN, DIM), jnp.float32),
        "w_ind": 0.05 * jax.random.normal(ks[3], (2 * HIDDEN, IND_DIM), jnp.float32),
        "w_out": 0.05 * jax.random.normal(ks[4], (DIM, HIDDEN), jnp.float32),
        "b_out": 0.05 * jax.random.normal(ks[5], (DIM,), jnp.float32),
    }

    out = rpe_attention_forward(params, x, indicator, HEADS, DIM_HEAD)
    out = jax.block_until_ready(out)

    ref = reference_forward(params, x, indicator, HEADS, DIM_HEAD)
    assert out.shape == (B, DIM, N), out.shape
    err = float(jnp.max(jnp.abs(out - ref)))
    assert jnp.allclose(out, ref, atol=5e-4, rtol=5e-4), err

    print("KERNEL_OK")
</pallas_src>

<mosaic_0001>
module attributes {stable_mosaic.version = 11 : i64} {
  func.func @_proj_kernel(%arg0: i32, %arg1: i32, %arg2: memref<1x16x16xf32, #tpu.memory_space<vmem>>, %arg3: memref<384x16xf32, #tpu.memory_space<vmem>>, %arg4: memref<1x384x16xf32, #tpu.memory_space<vmem>>) attributes {dimension_semantics = [#tpu.dimension_semantics<parallel>, #tpu.dimension_semantics<parallel>], iteration_bounds = array<i64: 2, 1>, scalar_prefetch = 0 : i64, scratch_operands = 0 : i64, tpu.core_type = #tpu.core_type<tc>, window_params = [{transform_indices = @transform_0, window_bounds = array<i64: 1, 16, 16>}, {pipeline_mode = #tpu.pipeline_mode<synchronous>, transform_indices = @transform_1, window_bounds = array<i64: 384, 16>}, {transform_indices = @transform_2, window_bounds = array<i64: 1, 384, 16>}]} {
    %c0 = arith.constant 0 : index
    %c0_0 = arith.constant 0 : index
    %0 = vector.load %arg3[%c0, %c0_0] : memref<384x16xf32, #tpu.memory_space<vmem>>, vector<384x16xf32>
    %c0_1 = arith.constant 0 : index
    %c0_2 = arith.constant 0 : index
    %c0_3 = arith.constant 0 : index
    %1 = vector.load %arg2[%c0_1, %c0_2, %c0_3] : memref<1x16x16xf32, #tpu.memory_space<vmem>>, vector<1x16x16xf32>
    %2 = vector.shape_cast %1 : vector<1x16x16xf32> to vector<16x16xf32>
    %cst = arith.constant dense<0.000000e+00> : vector<384x16xf32>
    %3 = tpu.matmul %0, %2, %cst {dimension_numbers = #tpu.dot_dimension_numbers<[1], [0], [0], [1], [0, 0, 1, 1], [], []>} : vector<384x16xf32>, vector<16x16xf32>, vector<384x16xf32> -> vector<384x16xf32>
    %c0_4 = arith.constant 0 : index
    %c0_5 = arith.constant 0 : index
    %c0_6 = arith.constant 0 : index
    %4 = vector.load %arg4[%c0_4, %c0_5, %c0_6] : memref<1x384x16xf32, #tpu.memory_space<vmem>>, vector<1x384x16xf32>
    %5 = vector.shape_cast %4 : vector<1x384x16xf32> to vector<384x16xf32>
    %6 = vector.shape_cast %3 : vector<384x16xf32> to vector<1x384x16xf32>
    tpu.vector_store %arg4[%c0_4, %c0_5, %c0_6], %6 {strides = array<i32>} : memref<1x384x16xf32, #tpu.memory_space<vmem>>, vector<1x384x16xf32>,
    return
  }
  func.func @transform_0(%arg0: i32, %arg1: i32) -> (i32, i32, i32) {
    %c0_i32 = arith.constant 0 : i32
    %c0_i32_0 = arith.constant 0 : i32
    return %arg0, %c0_i32, %arg1 : i32, i32, i32
  }
  func.func @transform_1(%arg0: i32, %arg1: i32) -> (i32, i32) {
    %c0_i32 = arith.constant 0 : i32
    %c0_i32_0 = arith.constant 0 : i32
    %c0_i32_1 = arith.constant 0 : i32
    return %c0_i32, %c0_i32_0 : i32, i32
  }
  func.func @transform_2(%arg0: i32, %arg1: i32) -> (i32, i32, i32) {
    %c0_i32 = arith.constant 0 : i32
    %c0_i32_0 = arith.constant 0 : i32
    return %arg0, %c0_i32, %arg1 : i32, i32, i32
  }
}

</mosaic_0001>

<bundles_post_ra>
// kernel: tpu_custom_call.1
= control target key start
LH: loop header
LB: loop body
LE: loop exit
PB: predicated region body
PF: predicated region fallthrough
CT: control target
= control target key end

     0   :  { %s1061_s9 = smov 0   ;;  %s1063_s10 = smov 0   ;;  %s1388_s0 = inlined_call_operand.vmem [shape: f32[2,16,16], index: 0, kind: input, shape index: {}]   ;;  %s1389_s1 = inlined_call_operand.vmem [shape: f32[384,16], index: 1, kind: input, shape index: {}]   ;;  %s1390_s2 = inlined_call_operand.vmem [shape: f32[2,384,16], index: 2, kind: output, shape index: {}]  }
   0x1   :  { %s1065_s11 = smov 0  }
   0x2 LB: > { %s24_s12 = sadd.s32 1, %s1040_s10  ;;  %p810_p0 = scmp.ge.s32.totalorder %s1044_s11, 1  ;;  %s1044_s11 = sphi %s1065_s11, %s12_s11   ;;  %s1040_s10 = sphi %s1063_s10, %s1392_s10   ;;  %s1036_s9 = sphi %s1061_s9, %s1391_s9  }
   0x3   : > { %p26_p1 = scmp.ge.s32.totalorder %s24_s12, 2  ;;  %p131_p2 = scmp.lt.s32.totalorder %s1044_s11, 3 }
   0x5   : > { %s1394_s12 = smov (%p26_p1, %s24_s12), 0  ;;  %p132_p3 = pnand %p810_p0, %p131_p2 }
   0x6   : > { %p159_p4 = scmp.lt.s32.totalorder (!%p132_p3), %s1036_s9, 1  ;;  %v175_v0 = vld [vmem:[%s1389_s1] sm:$0xff] (!%p132_p3)  ;;  %vm225_vm0 = vcmask (!%p132_p3), 130048   ;;  %v176_v5 = vld [vmem:[%s1389_s1 + $0x8] sm:$0xff] (!%p132_p3)  ;;  %v177_v7 = vld [vmem:[%s1389_s1 + $0x10] sm:$0xff] (!%p132_p3) }
   0x7   : > { %135 = sbr.rel (%p132_p3) target bundleno = 282 (0x11a), region = 28  ;;  %v199_v1 = vld [vmem:[%s1389_s1 + $0xc0] sm:$0xff] (!%p132_p3)  ;;  %919 = vmatprep.mubr.msk.f32.mxu0 (!%p132_p3), %vm225_vm0, %v175_v0  ;;  %v200_v6 = vld [vmem:[%s1389_s1 + $0xc8] sm:$0xff] (!%p132_p3)  ;;  %v201_v8 = vld [vmem:[%s1389_s1 + $0xd0] sm:$0xff] (!%p132_p3) }
   0x8   : > { %955 = vmatprep.mubr.msk.f32.mxu1 (!%p132_p3), %vm225_vm0, %v199_v1  ;;  %v178_v9 = vld [vmem:[%s1389_s1 + $0x18] sm:$0xff] (!%p132_p3)  ;;  %v179_v11 = vld [vmem:[%s1389_s1 + $0x20] sm:$0xff] (!%p132_p3)  ;;  %v180_v13 = vld [vmem:[%s1389_s1 + $0x28] sm:$0xff] (!%p132_p3) }
   0x9   : > { %v202_v10 = vld [vmem:[%s1389_s1 + $0xd8] sm:$0xff] (!%p132_p3)  ;;  %v203_v12 = vld [vmem:[%s1389_s1 + $0xe0] sm:$0xff] (!%p132_p3)  ;;  %v204_v14 = vld [vmem:[%s1389_s1 + $0xe8] sm:$0xff] (!%p132_p3) }
   0xa   : > { %v181_v15 = vld [vmem:[%s1389_s1 + $0x30] sm:$0xff] (!%p132_p3)  ;;  %v182_v17 = vld [vmem:[%s1389_s1 + $0x38] sm:$0xff] (!%p132_p3)  ;;  %v183_v19 = vld [vmem:[%s1389_s1 + $0x40] sm:$0xff] (!%p132_p3) }
   0xb   : > { %v205_v16 = vld [vmem:[%s1389_s1 + $0xf0] sm:$0xff] (!%p132_p3)  ;;  %v206_v18 = vld [vmem:[%s1389_s1 + $0xf8] sm:$0xff] (!%p132_p3)  ;;  %v207_v20 = vld [vmem:[%s1389_s1 + $0x100] sm:$0xff] (!%p132_p3) }
   0xc   : > { %v184_v21 = vld [vmem:[%s1389_s1 + $0x48] sm:$0xff] (!%p132_p3)  ;;  %v185_v23 = vld [vmem:[%s1389_s1 + $0x50] sm:$0xff] (!%p132_p3)  ;;  %v186_v25 = vld [vmem:[%s1389_s1 + $0x58] sm:$0xff] (!%p132_p3) }
   0xd   : > { %v208_v22 = vld [vmem:[%s1389_s1 + $0x108] sm:$0xff] (!%p132_p3)  ;;  %v209_v24 = vld [vmem:[%s1389_s1 + $0x110] sm:$0xff] (!%p132_p3)  ;;  %v210_v26 = vld [vmem:[%s1389_s1 + $0x118] sm:$0xff] (!%p132_p3) }
   0xe   : > { %s1396_s9 = smov (!%p159_p4, %s1036_s9), 1  ;;  %v187_v27 = vld [vmem:[%s1389_s1 + $0x60] sm:$0xff]  ;;  %v188_v29 = vld [vmem:[%s1389_s1 + $0x68] sm:$0xff]  ;;  %v189_v31 = vld [vmem:[%s1389_s1 + $0x70] sm:$0xff] }
   0xf   : > { %s864_s17 = sshll.u32 %s1396_s9, 4  ;;  %v211_v28 = vld [vmem:[%s1389_s1 + $0x120] sm:$0xff]  ;;  %v212_v30 = vld [vmem:[%s1389_s1 + $0x128] sm:$0xff]  ;;  %v213_v32 = vld [vmem:[%s1389_s1 + $0x130] sm:$0xff] }
  0x10   : > { %s166_s20 = scalar_lea.vmem %s1388_s0, %s864_s17  ;;  %v190_v33 = vld [vmem:[%s1389_s1 + $0x78] sm:$0xff]  ;;  %v191_v35 = vld [vmem:[%s1389_s1 + $0x80] sm:$0xff]  ;;  %v192_v37 = vld [vmem:[%s1389_s1 + $0x88] sm:$0xff]  ;;  %s997_s17 = smul.u32 384, %s1396_s9 }
  0x11   : > { %v223_v2 = vld [vmem:[%s166_s20] sm:$0xff]  ;;  %v224_v3 = vld [vmem:[%s166_s20 + $0x8] sm:$0xff]  ;;  %v214_v34 = vld [vmem:[%s1389_s1 + $0x138] sm:$0xff] }
  0x12   : > { %v991_v4 = vpack.c.bf16 %v224_v3, %v223_v2  ;;  %v215_v36 = vld [vmem:[%s1389_s1 + $0x140] sm:$0xff]  ;;  %v216_v38 = vld [vmem:[%s1389_s1 + $0x148] sm:$0xff]  ;;  %v193_v39 = vld [vmem:[%s1389_s1 + $0x90] sm:$0xff]  ;;  %s1281_s20 = scalar_lea.vmem %s1390_s2, %s997_s17 }
  0x13   : > { %v217_v40 = vld [vmem:[%s1389_s1 + $0x150] sm:$0xff]  ;;  %v194_v41 = vld [vmem:[%s1389_s1 + $0x98] sm:$0xff]  ;;  %v195_v43 = vld [vmem:[%s1389_s1 + $0xa0] sm:$0xff] }
  0x14   : > { %992 = vmatprep.subr.bf16.mxu0 %v991_v4  ;;  %995 = vmatprep.subr.bf16.mxu1 %v991_v4  ;;  %v218_v42 = vld [vmem:[%s1389_s1 + $0x158] sm:$0xff]  ;;  %v219_v44 = vld [vmem:[%s1389_s1 + $0x160] sm:$0xff]  ;;  %v196_v45 = vld [vmem:[%s1389_s1 + $0xa8] sm:$0xff] }
  0x15   : > { %994 = vmatpush3.bf16.msra.mxu0 %v991_v4  ;;  %996 = vmatpush3.bf16.msra.mxu1 %v991_v4  ;;  %v220_v46 = vld [vmem:[%s1389_s1 + $0x168] sm:$0xff]  ;;  %v197_v47 = vld [vmem:[%s1389_s1 + $0xb0] sm:$0xff]  ;;  %v198_v49 = vld [vmem:[%s1389_s1 + $0xb8] sm:$0xff] }
  0x16   : > { %v221_v48 = vld [vmem:[%s1389_s1 + $0x170] sm:$0xff]  ;;  %v222_v50 = vld [vmem:[%s1389_s1 + $0x178] sm:$0xff] }
  0x18   : > { %920 = vmatmul.mubr.msk.f32.vlgmr.msra.gmra.mrb[0].mxu0 %vm225_vm0, %v176_v5  ;;  %956 = vmatmul.mubr.msk.f32.vlgmr.msra.gmra.mrb[0].mxu1 %vm225_vm0, %v200_v6 }
  0x19   : > { %922 = vmatprep.mubr.msk.f32.mxu0 %vm225_vm0, %v177_v7  ;;  %958 = vmatprep.mubr.msk.f32.mxu1 %vm225_vm0, %v201_v8 }
  0x1c   : > { %923 = vmatmul.mubr.msk.f32.gmra.mrb[2].mxu0 %vm225_vm0, %v178_v9  ;;  %959 = vmatmul.mubr.msk.f32.gmra.mrb[2].mxu1 %vm225_vm0, %v202_v10 }
  0x1d   : > { %925 = vmatprep.mubr.msk.f32.mxu0 %vm225_vm0, %v179_v11  ;;  %961 = vmatprep.mubr.msk.f32.mxu1 %vm225_vm0, %v203_v12 }
  0x20   : > { %926 = vmatmul.mubr.msk.f32.gmra.mrb[4].mxu0 %vm225_vm0, %v180_v13  ;;  %962 = vmatmul.mubr.msk.f32.gmra.mrb[4].mxu1 %vm225_vm0, %v204_v14 }
  0x21   : > { %928 = vmatprep.mubr.msk.f32.mxu0 %vm225_vm0, %v181_v15  ;;  %964 = vmatprep.mubr.msk.f32.mxu1 %vm225_vm0, %v205_v16 }
  0x24   : > { %929 = vmatmul.mubr.msk.f32.gmra.mrb[6].mxu0 %vm225_vm0, %v182_v17  ;;  %965 = vmatmul.mubr.msk.f32.gmra.mrb[6].mxu1 %vm225_vm0, %v206_v18 }
  0x25   : > { %931 = vmatprep.mubr.msk.f32.mxu0 %vm225_vm0, %v183_v19  ;;  %967 = vmatprep.mubr.msk.f32.mxu1 %vm225_vm0, %v207_v20 }
  0x28   : > { %932 = vmatmul.mubr.msk.f32.gmra.mrb[8].mxu0 %vm225_vm0, %v184_v21  ;;  %968 = vmatmul.mubr.msk.f32.gmra.mrb[8].mxu1 %vm225_vm0, %v208_v22 }
  0x29   : > { %934 = vmatprep.mubr.msk.f32.mxu0 %vm225_vm0, %v185_v23  ;;  %970 = vmatprep.mubr.msk.f32.mxu1 %vm225_vm0, %v209_v24 }
  0x2c   : > { %935 = vmatmul.mubr.msk.f32.gmra.mrb[10].mxu0 %vm225_vm0, %v186_v25  ;;  %971 = vmatmul.mubr.msk.f32.gmra.mrb[10].mxu1 %vm225_vm0, %v210_v26 }
  0x2d   : > { %937 = vmatprep.mubr.msk.f32.mxu0 %vm225_vm0, %v187_v27  ;;  %973 = vmatprep.mubr.msk.f32.mxu1 %vm225_vm0, %v211_v28 }
  0x30   : > { %938 = vmatmul.mubr.msk.f32.gmra.mrb[12].mxu0 %vm225_vm0, %v188_v29  ;;  %974 = vmatmul.mubr.msk.f32.gmra.mrb[12].mxu1 %vm225_vm0, %v212_v30 }
  0x31   : > { %940 = vmatprep.mubr.msk.f32.mxu0 %vm225_vm0, %v189_v31  ;;  %976 = vmatprep.mubr.msk.f32.mxu1 %vm225_vm0, %v213_v32 }
  0x34   : > { %941 = vmatmul.mubr.msk.f32.gmra.mrb[14].mxu0 %vm225_vm0, %v190_v33  ;;  %977 = vmatmul.mubr.msk.f32.gmra.mrb[14].mxu1 %vm225_vm0, %v214_v34 }
  0x35   : > { %943 = vmatprep.mubr.msk.f32.mxu0 %vm225_vm0, %v191_v35  ;;  %979 = vmatprep.mubr.msk.f32.mxu1 %vm225_vm0, %v215_v36 }
  0x38   : > { %944 = vmatmul.mubr.msk.f32.gmra.mrb[16].mxu0 %vm225_vm0, %v192_v37  ;;  %980 = vmatmul.mubr.msk.f32.gmra.mrb[16].mxu1 %vm225_vm0, %v216_v38 }
  0x39   : > { %946 = vmatprep.mubr.msk.f32.mxu0 %vm225_vm0, %v193_v39  ;;  %982 = vmatprep.mubr.msk.f32.mxu1 %vm225_vm0, %v217_v40 }
  0x3c   : > { %947 = vmatmul.mubr.msk.f32.gmra.mrb[18].mxu0 %vm225_vm0, %v194_v41  ;;  %983 = vmatmul.mubr.msk.f32.gmra.mrb[18].mxu1 %vm225_vm0, %v218_v42 }
  0x3d   : > { %949 = vmatprep.mubr.msk.f32.mxu0 %vm225_vm0, %v195_v43  ;;  %985 = vmatprep.mubr.msk.f32.mxu1 %vm225_vm0, %v219_v44 }
  0x40   : > { %950 = vmatmul.mubr.msk.f32.gmra.mrb[20].mxu0 %vm225_vm0, %v196_v45  ;;  %986 = vmatmul.mubr.msk.f32.gmra.mrb[20].mxu1 %vm225_vm0, %v220_v46 }
  0x41   : > { %952 = vmatprep.mubr.msk.f32.mxu0 %vm225_vm0, %v197_v47  ;;  %988 = vmatprep.mubr.msk.f32.mxu1 %vm225_vm0, %v221_v48 }
  0x44   : > { %953 = vmatmul.mubr.msk.f32.gmra.mrb[22].mxu0 %vm225_vm0, %v198_v49  ;;  %989 = vmatmul.mubr.msk.f32.gmra.mrb[22].mxu1 %vm225_vm0, %v222_v50 }
  0xeb   : > { %v921_v51 = vpop.f32.mrb[0].mxu0  ;;  %v957_v52 = vpop.f32.mrb[0].mxu1 }
  0xec   : > { %676 = vst.msk [vmem:[%s1281_s20 + $0x8] sm:$0xff] %vm225_vm0, %v921_v51  ;;  %700 = vst.msk [vmem:[%s1281_s20 + $0xc8] sm:$0xff] %vm225_vm0, %v957_v52  ;;  %v436_v53 = vpop.f32.mrb[1].mxu0  ;;  %v556_v54 = vpop.f32.mrb[1].mxu1 }
  0xed   : > { %675 = vst.msk [vmem:[%s1281_s20] sm:$0xff] %vm225_vm0, %v436_v53  ;;  %699 = vst.msk [vmem:[%s1281_s20 + $0xc0] sm:$0xff] %vm225_vm0, %v556_v54 }
  0xef   : > { %v924_v55 = vpop.f32.mrb[2].mxu0  ;;  %v960_v56 = vpop.f32.mrb[2].mxu1 }
  0xf0   : > { %678 = vst.msk [vmem:[%s1281_s20 + $0x18] sm:$0xff] %vm225_vm0, %v924_v55  ;;  %702 = vst.msk [vmem:[%s1281_s20 + $0xd8] sm:$0xff] %vm225_vm0, %v960_v56  ;;  %v446_v57 = vpop.f32.mrb[3].mxu0  ;;  %v566_v58 = vpop.f32.mrb[3].mxu1 }
  0xf1   : > { %677 = vst.msk [vmem:[%s1281_s20 + $0x10] sm:$0xff] %vm225_vm0, %v446_v57  ;;  %701 = vst.msk [vmem:[%s1281_s20 + $0xd0] sm:$0xff] %vm225_vm0, %v566_v58 }
  0xf3   : > { %v927_v59 = vpop.f32.mrb[4].mxu0  ;;  %v963_v60 = vpop.f32.mrb[4].mxu1 }
  0xf4   : > { %680 = vst.msk [vmem:[%s1281_s20 + $0x28] sm:$0xff] %vm225_vm0, %v927_v59  ;;  %704 = vst.msk [vmem:[%s1281_s20 + $0xe8] sm:$0xff] %vm225_vm0, %v963_v60  ;;  %v456_v61 = vpop.f32.mrb[5].mxu0  ;;  %v576_v62 = vpop.f32.mrb[5].mxu1 }
  0xf5   : > { %679 = vst.msk [vmem:[%s1281_s20 + $0x20] sm:$0xff] %vm225_vm0, %v456_v61  ;;  %703 = vst.msk [vmem:[%s1281_s20 + $0xe0] sm:$0xff] %vm225_vm0, %v576_v62 }
  0xf7   : > { %v930_v63 = vpop.f32.mrb[6].mxu0  ;;  %v966_v0 = vpop.f32.mrb[6].mxu1 }
  0xf8   : > { %682 = vst.msk [vmem:[%s1281_s20 + $0x38] sm:$0xff] %vm225_vm0, %v930_v63  ;;  %706 = vst.msk [vmem:[%s1281_s20 + $0xf8] sm:$0xff] %vm225_vm0, %v966_v0  ;;  %v466_v1 = vpop.f32.mrb[7].mxu0  ;;  %v586_v2 = vpop.f32.mrb[7].mxu1 }
  0xf9   : > { %681 = vst.msk [vmem:[%s1281_s20 + $0x30] sm:$0xff] %vm225_vm0, %v466_v1  ;;  %705 = vst.msk [vmem:[%s1281_s20 + $0xf0] sm:$0xff] %vm225_vm0, %v586_v2 }
  0xfb   : > { %v933_v3 = vpop.f32.mrb[8].mxu0  ;;  %v969_v4 = vpop.f32.mrb[8].mxu1 }
  0xfc   : > { %684 = vst.msk [vmem:[%s1281_s20 + $0x48] sm:$0xff] %vm225_vm0, %v933_v3  ;;  %708 = vst.msk [vmem:[%s1281_s20 + $0x108] sm:$0xff] %vm225_vm0, %v969_v4  ;;  %v476_v5 = vpop.f32.mrb[9].mxu0  ;;  %v596_v6 = vpop.f32.mrb[9].mxu1 }
  0xfd   : > { %683 = vst.msk [vmem:[%s1281_s20 + $0x40] sm:$0xff] %vm225_vm0, %v476_v5  ;;  %707 = vst.msk [vmem:[%s1281_s20 + $0x100] sm:$0xff] %vm225_vm0, %v596_v6 }
  0xff   : > { %v936_v7 = vpop.f32.mrb[10].mxu0  ;;  %v972_v8 = vpop.f32.mrb[10].mxu1 }
 0x100   : > { %686 = vst.msk [vmem:[%s1281_s20 + $0x58] sm:$0xff] %vm225_vm0, %v936_v7  ;;  %710 = vst.msk [vmem:[%s1281_s20 + $0x118] sm:$0xff] %vm225_vm0, %v972_v8  ;;  %v486_v9 = vpop.f32.mrb[11].mxu0  ;;  %v606_v10 = vpop.f32.mrb[11].mxu1 }
 0x101   : > { %685 = vst.msk [vmem:[%s1281_s20 + $0x50] sm:$0xff] %vm225_vm0, %v486_v9  ;;  %709 = vst.msk [vmem:[%s1281_s20 + $0x110] sm:$0xff] %vm225_vm0, %v606_v10 }
 0x103   : > { %v939_v11 = vpop.f32.mrb[12].mxu0  ;;  %v975_v12 = vpop.f32.mrb[12].mxu1 }
 0x104   : > { %688 = vst.msk [vmem:[%s1281_s20 + $0x68] sm:$0xff] %vm225_vm0, %v939_v11  ;;  %712 = vst.msk [vmem:[%s1281_s20 + $0x128] sm:$0xff] %vm225_vm0, %v975_v12  ;;  %v496_v13 = vpop.f32.mrb[13].mxu0  ;;  %v616_v14 = vpop.f32.mrb[13].mxu1 }
 0x105   : > { %687 = vst.msk [vmem:[%s1281_s20 + $0x60] sm:$0xff] %vm225_vm0, %v496_v13  ;;  %711 = vst.msk [vmem:[%s1281_s20 + $0x120] sm:$0xff] %vm225_vm0, %v616_v14 }
 0x107   : > { %v942_v15 = vpop.f32.mrb[14].mxu0  ;;  %v978_v16 = vpop.f32.mrb[14].mxu1 }
 0x108   : > { %690 = vst.msk [vmem:[%s1281_s20 + $0x78] sm:$0xff] %vm225_vm0, %v942_v15  ;;  %714 = vst.msk [vmem:[%s1281_s20 + $0x138] sm:$0xff] %vm225_vm0, %v978_v16  ;;  %v506_v17 = vpop.f32.mrb[15].mxu0  ;;  %v626_v18 = vpop.f32.mrb[15].mxu1 }
 0x109   : > { %689 = vst.msk [vmem:[%s1281_s20 + $0x70] sm:$0xff] %vm225_vm0, %v506_v17  ;;  %713 = vst.msk [vmem:[%s1281_s20 + $0x130] sm:$0xff] %vm225_vm0, %v626_v18 }
 0x10b   : > { %v945_v19 = vpop.f32.mrb[16].mxu0  ;;  %v981_v20 = vpop.f32.mrb[16].mxu1 }
 0x10c   : > { %692 = vst.msk [vmem:[%s1281_s20 + $0x88] sm:$0xff] %vm225_vm0, %v945_v19  ;;  %716 = vst.msk [vmem:[%s1281_s20 + $0x148] sm:$0xff] %vm225_vm0, %v981_v20  ;;  %v516_v21 = vpop.f32.mrb[17].mxu0  ;;  %v636_v22 = vpop.f32.mrb[17].mxu1 }
 0x10d   : > { %691 = vst.msk [vmem:[%s1281_s20 + $0x80] sm:$0xff] %vm225_vm0, %v516_v21  ;;  %715 = vst.msk [vmem:[%s1281_s20 + $0x140] sm:$0xff] %vm225_vm0, %v636_v22 }
 0x10f   : > { %v948_v23 = vpop.f32.mrb[18].mxu0  ;;  %v984_v24 = vpop.f32.mrb[18].mxu1 }
 0x110   : > { %694 = vst.msk [vmem:[%s1281_s20 + $0x98] sm:$0xff] %vm225_vm0, %v948_v23  ;;  %718 = vst.msk [vmem:[%s1281_s20 + $0x158] sm:$0xff] %vm225_vm0, %v984_v24  ;;  %v526_v25 = vpop.f32.mrb[19].mxu0  ;;  %v646_v26 = vpop.f32.mrb[19].mxu1 }
 0x111   : > { %693 = vst.msk [vmem:[%s1281_s20 + $0x90] sm:$0xff] %vm225_vm0, %v526_v25  ;;  %717 = vst.msk [vmem:[%s1281_s20 + $0x150] sm:$0xff] %vm225_vm0, %v646_v26 }
 0x113   : > { %v951_v27 = vpop.f32.mrb[20].mxu0  ;;  %v987_v28 = vpop.f32.mrb[20].mxu1 }
 0x114   : > { %696 = vst.msk [vmem:[%s1281_s20 + $0xa8] sm:$0xff] %vm225_vm0, %v951_v27  ;;  %720 = vst.msk [vmem:[%s1281_s20 + $0x168] sm:$0xff] %vm225_vm0, %v987_v28  ;;  %v536_v29 = vpop.f32.mrb[21].mxu0  ;;  %v656_v30 = vpop.f32.mrb[21].mxu1 }
 0x115   : > { %695 = vst.msk [vmem:[%s1281_s20 + $0xa0] sm:$0xff] %vm225_vm0, %v536_v29  ;;  %719 = vst.msk [vmem:[%s1281_s20 + $0x160] sm:$0xff] %vm225_vm0, %v656_v30 }
 0x117   : > { %v954_v31 = vpop.f32.mrb[22].mxu0  ;;  %v990_v32 = vpop.f32.mrb[22].mxu1 }
 0x118   : > { %698 = vst.msk [vmem:[%s1281_s20 + $0xb8] sm:$0xff] %vm225_vm0, %v954_v31  ;;  %722 = vst.msk [vmem:[%s1281_s20 + $0x178] sm:$0xff] %vm225_vm0, %v990_v32  ;;  %v546_v33 = vpop.f32.mrb[23].mxu0  ;;  %v666_v34 = vpop.f32.mrb[23].mxu1 }
 0x119   : > { %697 = vst.msk [vmem:[%s1281_s20 + $0xb0] sm:$0xff] %vm225_vm0, %v546_v33  ;;  %721 = vst.msk [vmem:[%s1281_s20 + $0x170] sm:$0xff] %vm225_vm0, %v666_v34 }
 0x11a PF: > { %s12_s11 = sadd.s32 1, %s1044_s11   ;;  %s1391_s9 = smov %s1040_s10 }
 0x11b   : > { %p9_p5 = scmp.ge.s32.totalorder %s12_s11, 4   ;;  %s1392_s10 = smov %s1394_s12 }
 0x11d   :  { %11 = sbr.rel (!%p9_p5) target bundleno = 2 (0x2), region = 58 }

</bundles_post_ra>
